<compile_context>
chip_gen: v6e
topology: v6e:2x2x1
jax: 0.10.0
libtpu: 0.0.40
codegen_flags: <defaults>
</compile_context>

<pallas_src>
import math

import jax
import jax.numpy as jnp
from jax.experimental import pallas as pl
from jax.experimental.pallas import tpu as pltpu


def pgn_kernel(x_ref, w1_ref, b1_ref, w2_ref, b2_ref, out_ref):
    # x:  [bB, in]  f32     w1: [in, H]   f32    b1: [1, H]    f32
    # w2: [H, Npad] bf16    b2: [1, Npad] f32    out:[bB, Npad] f32
    x = x_ref[...]

    # Layer 1 on the MXU (K = in_size is tiny; MXU pads it internally and the
    # MXU slot is otherwise idle here).
    h = jnp.dot(x, w1_ref[...], preferred_element_type=jnp.float32)
    h = h + b1_ref[...]

    # ReLU on the VPU.
    h = jnp.maximum(h, 0.0)

    # Layer 2 on the MXU: bf16 x bf16 -> f32 accumulation, lane-dense output.
    logits = jnp.dot(h.astype(jnp.bfloat16), w2_ref[...],
                     preferred_element_type=jnp.float32)
    logits = logits + b2_ref[...]

    out_ref[...] = logits.astype(out_ref.dtype)


def prepare_pgn_params(w1, b1, w2, b2):
    """One-time parameter prep (hoisted out of the per-step forward):
    pad the output dim of w2/b2 to a multiple of 128 lanes and store w2 in
    bfloat16 (halves the dominant weight DMA; accumulation stays f32)."""
    hidden, n_actions = w2.shape
    n_pad = pl.cdiv(n_actions, 128) * 128
    w2_p = (jnp.zeros((hidden, n_pad), jnp.bfloat16)
            .at[:, :n_actions].set(w2.astype(jnp.bfloat16)))
    b2_p = (jnp.zeros((1, n_pad), jnp.float32)
            .at[:, :n_actions].set(b2.reshape(1, -1).astype(jnp.float32)))
    return (w1.astype(jnp.float32),
            b1.reshape(1, -1).astype(jnp.float32),
            w2_p, b2_p)


def pgn_forward(x, w1, b1, w2_p, b2_p, n_actions):
    """Forward pass of PGN: ReLU MLP [in -> 128 -> n_actions] (returns logits).

    `w1, b1, w2_p, b2_p` must come from `prepare_pgn_params` (padded / bf16).
    """
    B, in_size = x.shape
    hidden = w1.shape[1]
    n_pad = w2_p.shape[1]

    # Batch tiling: whole batch in one block when small, otherwise 512-row
    # blocks sharded across TensorCores ("parallel" axis; 2 TCs on v7x).
    block_b = B if B <= 512 else 512
    assert B % block_b == 0, "batch must be divisible by the batch tile"
    grid = (B // block_b,)

    flops = 2 * B * (in_size * hidden + hidden * n_pad)
    bytes_accessed = (4 * (x.size + w1.size + b1.size + b2_p.size + B * n_pad)
                      + 2 * w2_p.size)

    out_padded = pl.pallas_call(
        pgn_kernel,
        out_shape=jax.ShapeDtypeStruct((B, n_pad), jnp.float32),
        grid_spec=pltpu.PrefetchScalarGridSpec(
            num_scalar_prefetch=0,
            grid=grid,
            in_specs=[
                pl.BlockSpec((block_b, in_size), lambda i: (i, 0)),   # x
                pl.BlockSpec((in_size, hidden), lambda i: (0, 0)),    # w1
                pl.BlockSpec((1, hidden), lambda i: (0, 0)),          # b1
                pl.BlockSpec((hidden, n_pad), lambda i: (0, 0)),      # w2 (bf16)
                pl.BlockSpec((1, n_pad), lambda i: (0, 0)),           # b2
            ],
            out_specs=pl.BlockSpec((block_b, n_pad), lambda i: (i, 0)),
        ),
        compiler_params=pltpu.CompilerParams(
            dimension_semantics=("parallel",)),
        cost_estimate=pl.CostEstimate(
            flops=flops, transcendentals=0, bytes_accessed=bytes_accessed),
    )(x, w1, b1, w2_p, b2_p)

    # Slice the real logits back out (padded columns are exactly zero and are
    # never exposed to downstream softmax).
    return out_padded[:, :n_actions]


def init_pgn_params(key, input_size, hidden, n_actions):
    """Deterministic init mimicking torch.nn.Linear default (uniform ±1/sqrt(fan_in))."""
    k1, k2, k3, k4 = jax.random.split(key, 4)
    bound1 = 1.0 / math.sqrt(input_size)
    bound2 = 1.0 / math.sqrt(hidden)
    # Stored as [in, out] for x @ W layout.
    w1 = jax.random.uniform(k1, (input_size, hidden), jnp.float32, -bound1, bound1)
    b1 = jax.random.uniform(k2, (1, hidden), jnp.float32, -bound1, bound1)
    w2 = jax.random.uniform(k3, (hidden, n_actions), jnp.float32, -bound2, bound2)
    b2 = jax.random.uniform(k4, (1, n_actions), jnp.float32, -bound2, bound2)
    return w1, b1, w2, b2


if __name__ == "__main__":
    # CartPole-v0: observation dim = 4, n_actions = 2.
    INPUT_SIZE = 4
    HIDDEN = 128
    N_ACTIONS = 2
    BATCH = 8  # multiple of 8 (f32 sublanes)

    key = jax.random.PRNGKey(0)
    k_x, k_p = jax.random.split(key)

    x = jax.random.normal(k_x, (BATCH, INPUT_SIZE), dtype=jnp.float32)
    w1, b1, w2, b2 = init_pgn_params(k_p, INPUT_SIZE, HIDDEN, N_ACTIONS)

    # One-time param prep (padding + bf16 weight cast) — NOT on the per-step path.
    params = prepare_pgn_params(w1, b1, w2, b2)

    logits = pgn_forward(x, *params, n_actions=N_ACTIONS)
    logits = jax.block_until_ready(logits)

    # Pure-JAX f32 reference of the same forward pass (tolerance covers the
    # bf16 weight storage of layer 2; accumulation in the kernel is f32).
    ref = jnp.maximum(x @ w1 + b1, 0.0) @ w2 + b2
    assert logits.shape == (BATCH, N_ACTIONS)
    assert jnp.allclose(logits, ref, atol=1e-2, rtol=1e-2), (
        f"max abs err {jnp.max(jnp.abs(logits - ref))}")

    print("KERNEL_OK")
</pallas_src>

<mosaic_0001>
module attributes {stable_mosaic.version = 11 : i64} {
  func.func @pgn_kernel(%arg0: i32, %arg1: memref<8x4xf32, #tpu.memory_space<vmem>>, %arg2: memref<4x128xf32, #tpu.memory_space<vmem>>, %arg3: memref<1x128xf32, #tpu.memory_space<vmem>>, %arg4: memref<128x128xbf16, #tpu.memory_space<vmem>>, %arg5: memref<1x128xf32, #tpu.memory_space<vmem>>, %arg6: memref<8x128xf32, #tpu.memory_space<vmem>>) attributes {dimension_semantics = [#tpu.dimension_semantics<parallel>], iteration_bounds = array<i64: 1>, scalar_prefetch = 0 : i64, scratch_operands = 0 : i64, tpu.core_type = #tpu.core_type<tc>, window_params = [{transform_indices = @transform_0, window_bounds = array<i64: 8, 4>}, {pipeline_mode = #tpu.pipeline_mode<synchronous>, transform_indices = @transform_1, window_bounds = array<i64: 4, 128>}, {pipeline_mode = #tpu.pipeline_mode<synchronous>, transform_indices = @transform_2, window_bounds = array<i64: 1, 128>}, {pipeline_mode = #tpu.pipeline_mode<synchronous>, transform_indices = @transform_3, window_bounds = array<i64: 128, 128>}, {pipeline_mode = #tpu.pipeline_mode<synchronous>, transform_indices = @transform_4, window_bounds = array<i64: 1, 128>}, {transform_indices = @transform_5, window_bounds = array<i64: 8, 128>}]} {
    %c0 = arith.constant 0 : index
    %c0_0 = arith.constant 0 : index
    %0 = vector.load %arg1[%c0, %c0_0] : memref<8x4xf32, #tpu.memory_space<vmem>>, vector<8x4xf32>
    %c0_1 = arith.constant 0 : index
    %c0_2 = arith.constant 0 : index
    %1 = vector.load %arg2[%c0_1, %c0_2] : memref<4x128xf32, #tpu.memory_space<vmem>>, vector<4x128xf32>
    %cst = arith.constant dense<0.000000e+00> : vector<8x128xf32>
    %2 = tpu.matmul %0, %1, %cst {dimension_numbers = #tpu.dot_dimension_numbers<[1], [0], [0], [1], [0, 0, 1, 1], [], []>} : vector<8x4xf32>, vector<4x128xf32>, vector<8x128xf32> -> vector<8x128xf32>
    %c0_3 = arith.constant 0 : index
    %c0_4 = arith.constant 0 : index
    %3 = vector.load %arg3[%c0_3, %c0_4] : memref<1x128xf32, #tpu.memory_space<vmem>>, vector<1x128xf32>
    %4 = vector.broadcast %3 : vector<1x128xf32> to vector<8x128xf32>
    %5 = arith.addf %2, %4 : vector<8x128xf32>
    %cst_5 = arith.constant 0.000000e+00 : f32
    %6 = vector.broadcast %cst_5 : f32 to vector<8x128xf32>
    %7 = arith.maximumf %5, %6 : vector<8x128xf32>
    %8 = arith.truncf %7 : vector<8x128xf32> to vector<8x128xbf16>
    %c0_6 = arith.constant 0 : index
    %c0_7 = arith.constant 0 : index
    %9 = vector.load %arg4[%c0_6, %c0_7] : memref<128x128xbf16, #tpu.memory_space<vmem>>, vector<128x128xbf16>
    %cst_8 = arith.constant dense<0.000000e+00> : vector<8x128xf32>
    %10 = tpu.matmul %8, %9, %cst_8 {dimension_numbers = #tpu.dot_dimension_numbers<[1], [0], [0], [1], [0, 0, 1, 1], [], []>} : vector<8x128xbf16>, vector<128x128xbf16>, vector<8x128xf32> -> vector<8x128xf32>
    %c0_9 = arith.constant 0 : index
    %c0_10 = arith.constant 0 : index
    %11 = vector.load %arg5[%c0_9, %c0_10] : memref<1x128xf32, #tpu.memory_space<vmem>>, vector<1x128xf32>
    %12 = vector.broadcast %11 : vector<1x128xf32> to vector<8x128xf32>
    %13 = arith.addf %10, %12 : vector<8x128xf32>
    %c0_11 = arith.constant 0 : index
    %c0_12 = arith.constant 0 : index
    %14 = vector.load %arg6[%c0_11, %c0_12] : memref<8x128xf32, #tpu.memory_space<vmem>>, vector<8x128xf32>
    tpu.vector_store %arg6[%c0_11, %c0_12], %13 {strides = array<i32>} : memref<8x128xf32, #tpu.memory_space<vmem>>, vector<8x128xf32>,
    return
  }
  func.func @transform_0(%arg0: i32) -> (i32, i32) {
    %c0_i32 = arith.constant 0 : i32
    %c0_i32_0 = arith.constant 0 : i32
    return %arg0, %c0_i32 : i32, i32
  }
  func.func @transform_1(%arg0: i32) -> (i32, i32) {
    %c0_i32 = arith.constant 0 : i32
    %c0_i32_0 = arith.constant 0 : i32
    %c0_i32_1 = arith.constant 0 : i32
    return %c0_i32, %c0_i32_0 : i32, i32
  }
  func.func @transform_2(%arg0: i32) -> (i32, i32) {
    %c0_i32 = arith.constant 0 : i32
    %c0_i32_0 = arith.constant 0 : i32
    %c0_i32_1 = arith.constant 0 : i32
    return %c0_i32, %c0_i32_0 : i32, i32
  }
  func.func @transform_3(%arg0: i32) -> (i32, i32) {
    %c0_i32 = arith.constant 0 : i32
    %c0_i32_0 = arith.constant 0 : i32
    %c0_i32_1 = arith.constant 0 : i32
    return %c0_i32, %c0_i32_0 : i32, i32
  }
  func.func @transform_4(%arg0: i32) -> (i32, i32) {
    %c0_i32 = arith.constant 0 : i32
    %c0_i32_0 = arith.constant 0 : i32
    %c0_i32_1 = arith.constant 0 : i32
    return %c0_i32, %c0_i32_0 : i32, i32
  }
  func.func @transform_5(%arg0: i32) -> (i32, i32) {
    %c0_i32 = arith.constant 0 : i32
    %c0_i32_0 = arith.constant 0 : i32
    return %arg0, %c0_i32 : i32, i32
  }
}

</mosaic_0001>

<bundles_post_ra>
// kernel: tpu_custom_call.1
= control target key start
LH: loop header
LB: loop body
LE: loop exit
PB: predicated region body
PF: predicated region fallthrough
CT: control target
= control target key end

     0   :  { %10 = vsyncpa [#allocation3], 0  ;;  %s412_s0 = inlined_call_operand.vmem [shape: f32[8,4], index: 0, kind: input, shape index: {}]   ;;  %s413_s1 = inlined_call_operand.vmem [shape: f32[4,128], index: 1, kind: input, shape index: {}]   ;;  %s414_s2 = inlined_call_operand.vmem [shape: f32[1,128], index: 2, kind: input, shape index: {}]   ;;  %s415_s3 = inlined_call_operand.hbm [shape: bf16[128,128], index: 3, kind: input, shape index: {}]   ;;  %s416_s4 = inlined_call_operand.vmem [shape: f32[1,128], index: 4, kind: input, shape index: {}]   ;;  %s417_s5 = inlined_call_operand.hbm [shape: f32[8,128], index: 5, kind: output, shape index: {}]  }
   0x1   :  { %11 = vsyncpa [#allocation4], 0  ;;  %s358_s18 = smov [#allocation2]  }
   0x2   :  { %s23_s19 = sshll.u32 %s358_s18, 4  ;;  %s24_s19 = int_to_ptr.vmem [resolvable:$true] %s23_s19 }
   0x3   :  { %s322_s20 = scalar_lea.vmem %s24_s19, 1024  ;;  %p327_p1 = scmp.lt.s32.totalorder %s24_s19, %s24_s19 }
   0x4   :  { %p323_p0 = scmp.ne.s32.totalorder %s24_s19, %s322_s20  ;;  %p328_p2 = scmp.lt.s32.totalorder %s322_s20, %s322_s20 }
   0x6   :  { %p329_p3 = por %p328_p2, %p327_p1 }
   0x8   :  { %p330_p4 = pnand %p329_p3, %p323_p0 }
   0xa   :  { %333 = shalt.err (!%p330_p4)
}
   0xb   :  { %s359_s21 = smov 64   ;;  %s360_s22 = smov 4  }
   0xc   :  { %29 = dma.hbm_to_vmem [thread:$0]  %s415_s3, 1024, %s24_s19, [#allocation3], %s359_s21, %s359_s21, %s360_s22  }
   0xd   :  { %354 = dma.done.wait [#allocation3], 1024  }
   0xe   :  { %355 = vsyncadd [#allocation3], 4294966272  ;;  %v361_v0 = vmov 0.0   ;;  %vm362_vm0 = vmmov 0   ;;  %vm49_vm1 = vcmask 1043456   ;;  %vm45_vm2 = vcmask 31744  }
   0xf   :  { %275 = vmatprep.subr.mxu0 %v361_v0  ;;  %277 = vmatprep.mubr.msk.f32.mxu0 %vm362_vm0, %v361_v0  ;;  %v37_v1 = vld [vmem:[%s413_s1] sm:$0xf]  ;;  %v306_v3 = vld [vmem:[#allocation2 + $0x38] sm:$0xff]   ;;  %v307_v4 = vld [vmem:[#allocation2 + $0x30] sm:$0xff]   ;;  %s363_s30 = smov [#allocation5]  }
  0x10   :  { %280 = vmatprep.subr.bf16.mxu1 %v361_v0  ;;  %296 = vmatprep.mubr.msk.bf16.mxu1 %vm362_vm0, %v361_v0  ;;  %v36_v2 = vld [vmem:[%s412_s0] sm:$0xff]  ;;  %v308_v5 = vld [vmem:[#allocation2 + $0x28] sm:$0xff]   ;;  %v310_v7 = vld [vmem:[#allocation2 + $0x18] sm:$0xff]   ;;  %s243_s6 = sshll.u32 %s363_s30, 4  ;;  %s244_s6 = int_to_ptr.vmem [resolvable:$true] %s243_s6 }
  0x11   :  { %276 = vmatpush3.msk.msra.mxu0 %vm49_vm1, %v37_v1  ;;  %281 = vmatpush3.bf16.msra.mxu1 %v306_v3  ;;  %v309_v6 = vld [vmem:[#allocation2 + $0x20] sm:$0xff]   ;;  %v311_v8 = vld [vmem:[#allocation2 + $0x10] sm:$0xff]   ;;  %v312_v9 = vld [vmem:[#allocation2 + $0x8] sm:$0xff]   ;;  %s334_s7 = scalar_lea.vmem %s244_s6, 128  ;;  %p339_p6 = scmp.lt.s32.totalorder %s244_s6, %s244_s6 }
  0x12   :  { %278 = vmatmul.mubr.msk.f32.vlgmr.msra.gmra.mxu0 %vm45_vm2, %v36_v2  ;;  %282 = vmatprep.subr.bf16.mxu1 %v361_v0  ;;  %v313_v10 = vld [vmem:[#allocation2] sm:$0xff]   ;;  %p335_p5 = scmp.ne.s32.totalorder %s244_s6, %s334_s7  ;;  %p340_p7 = scmp.lt.s32.totalorder %s334_s7, %s334_s7 }
  0x13   :  { %v252_v11 = vld [vmem:[%s414_s2] ss:$0 sm:$0xff] }
  0x14   :  { %v255_v17 = vld [vmem:[%s416_s4] ss:$0 sm:$0xff]  ;;  %p341_p8 = por %p340_p7, %p339_p6 }
  0x15   :  { %283 = vmatpush3.bf16.msra.mxu1 %v307_v4 }
  0x16   :  { %284 = vmatprep.subr.bf16.mxu1 %v361_v0  ;;  %p342_p9 = pnand %p341_p8, %p335_p5 }
  0x19   :  { %285 = vmatpush3.bf16.msra.mxu1 %v308_v5 }
  0x1a   :  { %286 = vmatprep.subr.bf16.mxu1 %v361_v0 }
  0x1d   :  { %287 = vmatpush3.bf16.msra.mxu1 %v309_v6 }
  0x1e   :  { %288 = vmatprep.subr.bf16.mxu1 %v361_v0 }
  0x21   :  { %289 = vmatpush3.bf16.msra.mxu1 %v310_v7 }
  0x22   :  { %290 = vmatprep.subr.bf16.mxu1 %v361_v0 }
  0x25   :  { %291 = vmatpush3.bf16.msra.mxu1 %v311_v8 }
  0x26   :  { %292 = vmatprep.subr.bf16.mxu1 %v361_v0 }
  0x29   :  { %293 = vmatpush3.bf16.msra.mxu1 %v312_v9 }
  0x2a   :  { %294 = vmatprep.subr.bf16.mxu1 %v361_v0 }
  0x2d   :  { %295 = vmatpush3.bf16.msra.mxu1 %v313_v10 }
  0xd2   :  { %v119_v12 = vpop.f32.mrf.mxu0 }
  0xd3   :  { %v120_v13 = vadd.f32 %v252_v11, %v119_v12 }
  0xd4   :  { %v279_v14 = vpop.f32.mrf.mxu0 }
  0xd5   :  { %v123_v15 = vmax.f32 %v120_v13, 0.0 }
  0xd7   :  { %v124_v16 = vpack.c.bf16 %v123_v15, %v123_v15 }
  0xd9   :  { %297 = vmatmul.mubr.bf16.vlgmr.msra.gmra.mxu1 %v124_v16 }
 0x199   :  { %v230_v18 = vpop.f32.mrf.mxu1 }
 0x19a   :  { %v231_v19 = vadd.f32 %v255_v17, %v230_v18 }
 0x19b   :  { %v298_v20 = vpop.f32.mrf.mxu1 }
 0x19c   :  { %236 = vst [vmem:[#allocation5] sm:$0xff] %v231_v19 }
 0x19d   :  { %v233_v21 = vpop.f32.mrf.mxu1 }
 0x19e   :  { %345 = shalt.err (!%p342_p9)
}
 0x19f   :  { %246 = dma.vmem_to_hbm [thread:$0]  %s244_s6, 128, %s417_s5, [#allocation4]   ;;  %v299_v22 = vpop.f32.mrf.mxu1 }
 0x1a0   :  { %356 = dma.done.wait [#allocation4], 128  }
 0x1a1   :  { %357 = vsyncadd [#allocation4], 4294967168 }
 0x1a2   :  { %250 = vsyncpa [#allocation3], 1 }
 0x1a3   :  { %251 = vsyncpa [#allocation4], 1 }

</bundles_post_ra>
